<compile_context>
chip_gen: v6e
topology: v6e:2x2x1
jax: 0.10.0
libtpu: 0.0.40
codegen_flags: <defaults>
</compile_context>

<pallas_src>
import jax
import jax.numpy as jnp
from jax.experimental import pallas as pl
from jax.experimental.pallas import tpu as pltpu

BN_EPS = 1e-5
LEAKY_SLOPE = 0.1


def _round_up(x, m):
    return ((x + m - 1) // m) * m


def _linear_block_kernel(x_ref, wT_ref, scale_ref, shift_ref, o_ref, acc_ref):
    k = pl.program_id(2)

    @pl.when(k == 0)
    def _():
        acc_ref[...] = jnp.zeros_like(acc_ref)

    # Matmul on the MXU, accumulate in f32 across the K grid axis.
    acc_ref[...] += jnp.dot(x_ref[...], wT_ref[...],
                            preferred_element_type=jnp.float32)

    @pl.when(k == pl.num_programs(2) - 1)
    def _():
        # Folded BatchNorm (scale/shift precomputed on host) + LeakyReLU(0.1).
        y = acc_ref[...] * scale_ref[...] + shift_ref[...]
        y = jnp.where(y >= 0, y, LEAKY_SLOPE * y)
        # Dropout: identity in eval mode.
        o_ref[...] = y.astype(o_ref.dtype)


def prepare_linear_block_params(weight, gamma, beta, running_mean, running_var):
    """One-time parameter prep (call OUTSIDE the per-step forward path):
       - transpose weight (out, in) -> (in, out) once (no per-call HBM transpose)
       - fold BatchNorm into a single (scale, shift) pair."""
    scale = gamma * jax.lax.rsqrt(running_var + BN_EPS)
    shift = beta - running_mean * scale
    return weight.T, scale, shift


def linear_block_forward(x, wT, scale, shift, *, tm=None, tn=None, tk=None):
    """x: (N, in_features) f32; wT: (in_features, out_features) f32 (pre-transposed);
       scale/shift: (out_features,) folded BatchNorm parameters."""
    n, k_in = x.shape
    k_in2, out_f = wT.shape
    assert k_in == k_in2, "weight/input feature mismatch"

    # Generation-agnostic default tiles: double-buffered f32 tiles stay well under
    # v7x's 32 MiB scoped VMEM while still being big enough (>=128 lanes, >=256 on
    # the K axis) to keep the MXU fed and hide the epilogue on v5e/v6e.
    tm = tm or min(256, _round_up(n, 8))
    tk = tk or min(512, _round_up(k_in, 128))
    tn = tn or min(512, _round_up(out_f, 128))

    m_pad = _round_up(n, tm)
    k_pad = _round_up(k_in, tk)
    n_pad = _round_up(out_f, tn)           # lane-dense output (multiple of 128)

    xp = x if (m_pad == n and k_pad == k_in) else jnp.pad(
        x, ((0, m_pad - n), (0, k_pad - k_in)))
    wp = wT if (k_pad == k_in and n_pad == out_f) else jnp.pad(
        wT, ((0, k_pad - k_in), (0, n_pad - out_f)))
    sc = jnp.pad(scale, (0, n_pad - out_f)).reshape(1, n_pad)
    sh = jnp.pad(shift, (0, n_pad - out_f)).reshape(1, n_pad)

    grid = (m_pad // tm, n_pad // tn, k_pad // tk)

    flops = 2 * m_pad * k_pad * n_pad
    bytes_accessed = 4 * (m_pad * k_pad + k_pad * n_pad + m_pad * n_pad + 2 * n_pad)

    out = pl.pallas_call(
        _linear_block_kernel,
        out_shape=jax.ShapeDtypeStruct((m_pad, n_pad), x.dtype),
        grid_spec=pltpu.PrefetchScalarGridSpec(
            num_scalar_prefetch=0,
            grid=grid,
            in_specs=[
                pl.BlockSpec((tm, tk), lambda i, j, k: (i, k)),   # x tile
                pl.BlockSpec((tk, tn), lambda i, j, k: (k, j)),   # W^T tile
                pl.BlockSpec((1, tn), lambda i, j, k: (0, j)),    # BN scale
                pl.BlockSpec((1, tn), lambda i, j, k: (0, j)),    # BN shift
            ],
            out_specs=pl.BlockSpec((tm, tn), lambda i, j, k: (i, j)),
            scratch_shapes=[pltpu.VMEM((tm, tn), jnp.float32)],
        ),
        compiler_params=pltpu.CompilerParams(
            dimension_semantics=("parallel", "parallel", "arbitrary"),
            vmem_limit_bytes=48 * 1024 * 1024,
        ),
        cost_estimate=pl.CostEstimate(
            flops=flops, transcendentals=0, bytes_accessed=bytes_accessed),
    )(xp, wp, sc, sh)

    return out[:n, :out_f]


def _reference(x, weight, gamma, beta, running_mean, running_var):
    y = x @ weight.T
    y = (y - running_mean) / jnp.sqrt(running_var + BN_EPS) * gamma + beta
    return jnp.where(y >= 0, y, LEAKY_SLOPE * y)


if __name__ == "__main__":
    key = jax.random.PRNGKey(0)
    k_x, k_w, k_g, k_b, k_m, k_v = jax.random.split(key, 6)

    batch = 8
    in_features = 32
    out_features = 64

    x = jax.random.normal(k_x, (batch, in_features), dtype=jnp.float32)

    # nn.Linear(in, out, bias=False): weight shape (out, in).
    bound = 1.0 / jnp.sqrt(in_features)
    weight = jax.random.uniform(k_w, (out_features, in_features),
                                minval=-bound, maxval=bound, dtype=jnp.float32)

    # BatchNorm1d(out): perturb away from trivial defaults so BN actually does work.
    gamma = 1.0 + 0.1 * jax.random.normal(k_g, (out_features,), dtype=jnp.float32)
    beta = 0.1 * jax.random.normal(k_b, (out_features,), dtype=jnp.float32)
    running_mean = 0.1 * jax.random.normal(k_m, (out_features,), dtype=jnp.float32)
    running_var = 1.0 + 0.1 * jax.random.uniform(k_v, (out_features,), dtype=jnp.float32)

    # One-time prep (weight transpose + BN fold), then the fused forward.
    wT, scale, shift = prepare_linear_block_params(
        weight, gamma, beta, running_mean, running_var)
    out = linear_block_forward(x, wT, scale, shift)
    out = jax.block_until_ready(out)

    ref = _reference(x, weight, gamma, beta, running_mean, running_var)
    assert out.shape == (batch, out_features)
    assert jnp.allclose(out, ref, atol=1e-5, rtol=1e-5), "mismatch vs reference"

    print("KERNEL_OK")
</pallas_src>

<mosaic_0001>
module attributes {stable_mosaic.version = 11 : i64} {
  func.func @_linear_block_kernel(%arg0: i32, %arg1: i32, %arg2: i32, %arg3: memref<8x128xf32, #tpu.memory_space<vmem>>, %arg4: memref<128x128xf32, #tpu.memory_space<vmem>>, %arg5: memref<1x128xf32, #tpu.memory_space<vmem>>, %arg6: memref<1x128xf32, #tpu.memory_space<vmem>>, %arg7: memref<8x128xf32, #tpu.memory_space<vmem>>, %arg8: memref<8x128xf32, #tpu.memory_space<vmem>>) attributes {dimension_semantics = [#tpu.dimension_semantics<parallel>, #tpu.dimension_semantics<parallel>, #tpu.dimension_semantics<arbitrary>], iteration_bounds = array<i64: 1, 1, 1>, scalar_prefetch = 0 : i64, scratch_operands = 1 : i64, tpu.core_type = #tpu.core_type<tc>, window_params = [{transform_indices = @transform_0, window_bounds = array<i64: 8, 128>}, {transform_indices = @transform_1, window_bounds = array<i64: 128, 128>}, {transform_indices = @transform_2, window_bounds = array<i64: 1, 128>}, {transform_indices = @transform_3, window_bounds = array<i64: 1, 128>}, {transform_indices = @transform_4, window_bounds = array<i64: 8, 128>}]} {
    %c0_i32 = arith.constant 0 : i32
    %0 = arith.cmpi eq, %arg2, %c0_i32 : i32
    %1 = arith.extui %0 : i1 to i32
    %c0_i32_0 = arith.constant 0 : i32
    %2 = arith.cmpi ne, %1, %c0_i32_0 : i32
    scf.if %2 {
      %cst_10 = arith.constant 0.000000e+00 : f32
      %12 = vector.broadcast %cst_10 : f32 to vector<8x128xf32>
      %c0_11 = arith.constant 0 : index
      %c0_12 = arith.constant 0 : index
      %13 = vector.load %arg8[%c0_11, %c0_12] : memref<8x128xf32, #tpu.memory_space<vmem>>, vector<8x128xf32>
      tpu.vector_store %arg8[%c0_11, %c0_12], %12 {strides = array<i32>} : memref<8x128xf32, #tpu.memory_space<vmem>>, vector<8x128xf32>,
    } else {
    }
    %c0 = arith.constant 0 : index
    %c0_1 = arith.constant 0 : index
    %3 = vector.load %arg8[%c0, %c0_1] : memref<8x128xf32, #tpu.memory_space<vmem>>, vector<8x128xf32>
    %c0_2 = arith.constant 0 : index
    %c0_3 = arith.constant 0 : index
    %4 = vector.load %arg3[%c0_2, %c0_3] : memref<8x128xf32, #tpu.memory_space<vmem>>, vector<8x128xf32>
    %c0_4 = arith.constant 0 : index
    %c0_5 = arith.constant 0 : index
    %5 = vector.load %arg4[%c0_4, %c0_5] : memref<128x128xf32, #tpu.memory_space<vmem>>, vector<128x128xf32>
    %cst = arith.constant dense<0.000000e+00> : vector<8x128xf32>
    %6 = tpu.matmul %4, %5, %cst {dimension_numbers = #tpu.dot_dimension_numbers<[1], [0], [0], [1], [0, 0, 1, 1], [], []>} : vector<8x128xf32>, vector<128x128xf32>, vector<8x128xf32> -> vector<8x128xf32>
    %7 = arith.addf %3, %6 : vector<8x128xf32>
    %c0_6 = arith.constant 0 : index
    %c0_7 = arith.constant 0 : index
    %8 = vector.load %arg8[%c0_6, %c0_7] : memref<8x128xf32, #tpu.memory_space<vmem>>, vector<8x128xf32>
    tpu.vector_store %arg8[%c0_6, %c0_7], %7 {strides = array<i32>} : memref<8x128xf32, #tpu.memory_space<vmem>>, vector<8x128xf32>,
    %c0_i32_8 = arith.constant 0 : i32
    %9 = arith.cmpi eq, %arg2, %c0_i32_8 : i32
    %10 = arith.extui %9 : i1 to i32
    %c0_i32_9 = arith.constant 0 : i32
    %11 = arith.cmpi ne, %10, %c0_i32_9 : i32
    scf.if %11 {
      %c0_10 = arith.constant 0 : index
      %c0_11 = arith.constant 0 : index
      %12 = vector.load %arg8[%c0_10, %c0_11] : memref<8x128xf32, #tpu.memory_space<vmem>>, vector<8x128xf32>
      %c0_12 = arith.constant 0 : index
      %c0_13 = arith.constant 0 : index
      %13 = vector.load %arg5[%c0_12, %c0_13] : memref<1x128xf32, #tpu.memory_space<vmem>>, vector<1x128xf32>
      %14 = vector.broadcast %13 : vector<1x128xf32> to vector<8x128xf32>
      %15 = arith.mulf %12, %14 : vector<8x128xf32>
      %c0_14 = arith.constant 0 : index
      %c0_15 = arith.constant 0 : index
      %16 = vector.load %arg6[%c0_14, %c0_15] : memref<1x128xf32, #tpu.memory_space<vmem>>, vector<1x128xf32>
      %17 = vector.broadcast %16 : vector<1x128xf32> to vector<8x128xf32>
      %18 = arith.addf %15, %17 : vector<8x128xf32>
      %cst_16 = arith.constant 0.000000e+00 : f32
      %19 = vector.broadcast %cst_16 : f32 to vector<8x128xf32>
      %20 = arith.cmpf oge, %18, %19 : vector<8x128xf32>
      %cst_17 = arith.constant 1.000000e-01 : f32
      %21 = vector.broadcast %cst_17 : f32 to vector<8x128xf32>
      %22 = arith.mulf %21, %18 : vector<8x128xf32>
      %23 = arith.select %20, %18, %22 : vector<8x128xi1>, vector<8x128xf32>
      %c0_18 = arith.constant 0 : index
      %c0_19 = arith.constant 0 : index
      %24 = vector.load %arg7[%c0_18, %c0_19] : memref<8x128xf32, #tpu.memory_space<vmem>>, vector<8x128xf32>
      tpu.vector_store %arg7[%c0_18, %c0_19], %23 {strides = array<i32>} : memref<8x128xf32, #tpu.memory_space<vmem>>, vector<8x128xf32>,
    } else {
    }
    return
  }
  func.func @transform_0(%arg0: i32, %arg1: i32, %arg2: i32) -> (i32, i32) {
    %c0_i32 = arith.constant 0 : i32
    return %arg0, %arg2 : i32, i32
  }
  func.func @transform_1(%arg0: i32, %arg1: i32, %arg2: i32) -> (i32, i32) {
    %c0_i32 = arith.constant 0 : i32
    return %arg2, %arg1 : i32, i32
  }
  func.func @transform_2(%arg0: i32, %arg1: i32, %arg2: i32) -> (i32, i32) {
    %c0_i32 = arith.constant 0 : i32
    %c0_i32_0 = arith.constant 0 : i32
    return %c0_i32, %arg1 : i32, i32
  }
  func.func @transform_3(%arg0: i32, %arg1: i32, %arg2: i32) -> (i32, i32) {
    %c0_i32 = arith.constant 0 : i32
    %c0_i32_0 = arith.constant 0 : i32
    return %c0_i32, %arg1 : i32, i32
  }
  func.func @transform_4(%arg0: i32, %arg1: i32, %arg2: i32) -> (i32, i32) {
    %c0_i32 = arith.constant 0 : i32
    return %arg0, %arg1 : i32, i32
  }
}

</mosaic_0001>

<bundles_post_ra>
// kernel: tpu_custom_call.1
= control target key start
LH: loop header
LB: loop body
LE: loop exit
PB: predicated region body
PF: predicated region fallthrough
CT: control target
= control target key end

     0   :  { %9 = vsyncpa [#allocation4], 0  ;;  %s353_s0 = inlined_call_operand.hbm [shape: f32[8,128], index: 0, kind: input, shape index: {}]   ;;  %s354_s1 = inlined_call_operand.hbm [shape: f32[128,128], index: 1, kind: input, shape index: {}]   ;;  %s355_s2 = inlined_call_operand.vmem [shape: f32[1,128], index: 2, kind: input, shape index: {}]   ;;  %s356_s3 = inlined_call_operand.vmem [shape: f32[1,128], index: 3, kind: input, shape index: {}]   ;;  %s357_s4 = inlined_call_operand.hbm [shape: f32[8,128], index: 4, kind: output, shape index: {}]  }
   0x1   :  { %10 = vsyncpa [#allocation7], 0 }
   0x2   :  { %11 = vsyncpa [#allocation5], 0  ;;  %s306_s15 = smov [#allocation3]   ;;  %s307_s17 = smov [#allocation6]  }
   0x3   :  { %s18_s16 = sshll.u32 %s306_s15, 4  ;;  %s27_s18 = sshll.u32 %s307_s17, 4  ;;  %s19_s16 = int_to_ptr.vmem [resolvable:$true] %s18_s16  ;;  %s28_s18 = int_to_ptr.vmem [resolvable:$true] %s27_s18 }
   0x4   :  { %s248_s19 = scalar_lea.vmem %s19_s16, 128  ;;  %p253_p1 = scmp.lt.s32.totalorder %s19_s16, %s19_s16 }
   0x5   :  { %p249_p0 = scmp.ne.s32.totalorder %s19_s16, %s248_s19  ;;  %p254_p2 = scmp.lt.s32.totalorder %s248_s19, %s248_s19 }
   0x7   :  { %p255_p3 = por %p254_p2, %p253_p1 }
   0x9   :  { %p256_p4 = pnand %p255_p3, %p249_p0 }
   0xb   :  { %259 = shalt.err (!%p256_p4)
}
   0xc   :  { %21 = dma.hbm_to_vmem [thread:$0]  %s353_s0, 128, %s19_s16, [#allocation4]  }
   0xd   :  { %s268_s22 = scalar_lea.vmem %s28_s18, 2048  ;;  %p273_p6 = scmp.lt.s32.totalorder %s28_s18, %s28_s18 }
   0xe   :  { %p269_p5 = scmp.ne.s32.totalorder %s28_s18, %s268_s22  ;;  %p274_p7 = scmp.lt.s32.totalorder %s268_s22, %s268_s22 }
  0x10   :  { %p275_p8 = por %p274_p7, %p273_p6 }
  0x12   :  { %p276_p9 = pnand %p275_p8, %p269_p5 }
  0x14   :  { %279 = shalt.err (!%p276_p9)
}
  0x15   :  { %s308_s23 = smov 128   ;;  %s309_s24 = smov 8  }
  0x16   :  { %33 = dma.hbm_to_vmem [thread:$0]  %s354_s1, 2048, %s28_s18, [#allocation7], %s308_s23, %s308_s23, %s309_s24  }
  0x17   :  { %300 = dma.done.wait [#allocation4], 128  }
  0x18   :  { %301 = vsyncadd [#allocation4], 4294967168 }
  0x19   :  { %302 = dma.done.wait [#allocation7], 2048  }
  0x1a   :  { %303 = vsyncadd [#allocation7], 4294965248  ;;  %v310_v0 = vmov 0.0   ;;  %vm311_vm0 = vmmov 0   ;;  %v66_v1 = vld [vmem:[#allocation6 + $0x78] sm:$0xff]  ;;  %v65_v2 = vld [vmem:[#allocation6 + $0x70] sm:$0xff] }
  0x1b   :  { %198 = vmatprep.subr.mxu0 %v310_v0  ;;  %230 = vmatprep.mubr.msk.f32.mxu0 %vm311_vm0, %v310_v0  ;;  %v64_v3 = vld [vmem:[#allocation6 + $0x68] sm:$0xff]  ;;  %v63_v4 = vld [vmem:[#allocation6 + $0x60] sm:$0xff]  ;;  %v62_v5 = vld [vmem:[#allocation6 + $0x58] sm:$0xff]  ;;  %s312_s29 = smov [#allocation8]  }
  0x1c   :  { %199 = vmatpush3.msra.mxu0 %v66_v1  ;;  %v61_v6 = vld [vmem:[#allocation6 + $0x50] sm:$0xff]  ;;  %v60_v7 = vld [vmem:[#allocation6 + $0x48] sm:$0xff]  ;;  %v59_v8 = vld [vmem:[#allocation6 + $0x40] sm:$0xff]  ;;  %s169_s30 = sshll.u32 %s312_s29, 4  ;;  %s170_s30 = int_to_ptr.vmem [resolvable:$true] %s169_s30 }
  0x1d   :  { %200 = vmatprep.subr.mxu0 %v310_v0  ;;  %v58_v9 = vld [vmem:[#allocation6 + $0x38] sm:$0xff]  ;;  %v57_v10 = vld [vmem:[#allocation6 + $0x30] sm:$0xff]  ;;  %v56_v11 = vld [vmem:[#allocation6 + $0x28] sm:$0xff]  ;;  %s280_s5 = scalar_lea.vmem %s170_s30, 128  ;;  %p285_p11 = scmp.lt.s32.totalorder %s170_s30, %s170_s30 }
  0x1e   :  { %201 = vmatpush3.msra.mxu0 %v65_v2  ;;  %v55_v12 = vld [vmem:[#allocation6 + $0x20] sm:$0xff]  ;;  %v54_v13 = vld [vmem:[#allocation6 + $0x18] sm:$0xff]  ;;  %v53_v14 = vld [vmem:[#allocation6 + $0x10] sm:$0xff]  ;;  %p281_p10 = scmp.ne.s32.totalorder %s170_s30, %s280_s5  ;;  %p286_p12 = scmp.lt.s32.totalorder %s280_s5, %s280_s5 }
  0x1f   :  { %202 = vmatprep.subr.mxu0 %v310_v0  ;;  %v52_v15 = vld [vmem:[#allocation6 + $0x8] sm:$0xff]  ;;  %v51_v16 = vld [vmem:[#allocation6] sm:$0xff]  ;;  %v50_v17 = vld [vmem:[#allocation3] sm:$0xff] }
  0x20   :  { %203 = vmatpush3.msra.mxu0 %v64_v3  ;;  %v179_v18 = vld [vmem:[%s355_s2] ss:$0 sm:$0xff]  ;;  %p287_p13 = por %p286_p12, %p285_p11 }
  0x21   :  { %204 = vmatprep.subr.mxu0 %v310_v0  ;;  %v180_v20 = vld [vmem:[%s356_s3] ss:$0 sm:$0xff] }
  0x22   :  { %205 = vmatpush3.msra.mxu0 %v63_v4  ;;  %p288_p0 = pnand %p287_p13, %p281_p10 }
  0x23   :  { %206 = vmatprep.subr.mxu0 %v310_v0 }
  0x24   :  { %207 = vmatpush3.msra.mxu0 %v62_v5 }
  0x25   :  { %208 = vmatprep.subr.mxu0 %v310_v0 }
  0x26   :  { %209 = vmatpush3.msra.mxu0 %v61_v6 }
  0x27   :  { %210 = vmatprep.subr.mxu0 %v310_v0 }
  0x28   :  { %211 = vmatpush3.msra.mxu0 %v60_v7 }
  0x29   :  { %212 = vmatprep.subr.mxu0 %v310_v0 }
  0x2a   :  { %213 = vmatpush3.msra.mxu0 %v59_v8 }
  0x2b   :  { %214 = vmatprep.subr.mxu0 %v310_v0 }
  0x2c   :  { %215 = vmatpush3.msra.mxu0 %v58_v9 }
  0x2d   :  { %216 = vmatprep.subr.mxu0 %v310_v0 }
  0x2e   :  { %217 = vmatpush3.msra.mxu0 %v57_v10 }
  0x2f   :  { %218 = vmatprep.subr.mxu0 %v310_v0 }
  0x30   :  { %219 = vmatpush3.msra.mxu0 %v56_v11 }
  0x31   :  { %220 = vmatprep.subr.mxu0 %v310_v0 }
  0x32   :  { %221 = vmatpush3.msra.mxu0 %v55_v12 }
  0x33   :  { %222 = vmatprep.subr.mxu0 %v310_v0 }
  0x34   :  { %223 = vmatpush3.msra.mxu0 %v54_v13 }
  0x35   :  { %224 = vmatprep.subr.mxu0 %v310_v0 }
  0x36   :  { %225 = vmatpush3.msra.mxu0 %v53_v14 }
  0x37   :  { %226 = vmatprep.subr.mxu0 %v310_v0 }
  0x38   :  { %227 = vmatpush3.msra.mxu0 %v52_v15 }
  0x39   :  { %228 = vmatprep.subr.mxu0 %v310_v0 }
  0x3a   :  { %229 = vmatpush3.msra.mxu0 %v51_v16 }
  0x3b   :  { %231 = vmatmul.mubr.f32.vlgmr.msra.gmra.mxu0 %v50_v17 }
  0xfb   :  { %v133_v19 = vpop.f32.mrf.mxu0 }
  0xfc   :  { %v150_v21 = vmul.f32 %v179_v18, %v133_v19 }
  0xfd   :  { %v232_v22 = vpop.f32.mrf.mxu0 }
  0xfe   :  { %v158_v23 = vadd.f32 %v180_v20, %v150_v21 }
 0x100   :  { %v160_v24 = vmul.f32 0.1, %v158_v23  ;;  %vm159_vm1 = vcmp.ge.f32.partialorder %v158_v23, 0.0 }
 0x102   :  { %v161_v25 = vsel %vm159_vm1, %v158_v23, %v160_v24 }
 0x103   :  { %162 = vst [vmem:[#allocation8] sm:$0xff] %v161_v25 }
 0x104   :  { %291 = shalt.err (!%p288_p0)
}
 0x105   :  { %172 = dma.vmem_to_hbm [thread:$0]  %s170_s30, 128, %s357_s4, [#allocation5]  }
 0x106   :  { %304 = dma.done.wait [#allocation5], 128  }
 0x107   :  { %305 = vsyncadd [#allocation5], 4294967168 }
 0x108   :  { %176 = vsyncpa [#allocation4], 1 }
 0x109   :  { %177 = vsyncpa [#allocation7], 1 }
 0x10a   :  { %178 = vsyncpa [#allocation5], 1 }

</bundles_post_ra>
